<compile_context>
chip_gen: v7x
topology: tpu7x:2x2x1
jax: 0.10.0
libtpu: 0.0.40
codegen_flags: <defaults>
</compile_context>

<pallas_src>
import functools

import jax
import jax.numpy as jnp
from jax.experimental import pallas as pl
from jax.experimental.pallas import tpu as pltpu


def _normalize_kernel(c_blk, chan_axis, compute_dtype,
                      means_ref, inv_sds_ref, x_ref, o_ref):
    """Block layout: (n_blk, c_blk, *spatial).  means/inv_sds: (C,) f32 in SMEM."""
    c0 = 0 if chan_axis is None else pl.program_id(chan_axis) * c_blk
    for ci in range(c_blk):                       # static loop, c_blk is small
        mean = means_ref[c0 + ci]                 # f32 scalar from SMEM
        inv_sd = inv_sds_ref[c0 + ci]             # f32 scalar from SMEM
        xc = x_ref[:, ci].astype(compute_dtype)   # no-op cast when dtypes match
        lanes = xc.shape[-1:]
        # Convert the per-channel constants on a lane vector (not on a scalar),
        # so the bf16 path never needs a bf16-typed scalar value.
        mean_v = jnp.broadcast_to(mean, lanes).astype(compute_dtype)
        inv_v = jnp.broadcast_to(inv_sd, lanes).astype(compute_dtype)
        o_ref[:, ci] = ((xc - mean_v) * inv_v).astype(o_ref.dtype)


def _best_divisor(n, limit, align=1):
    """Largest divisor of n that is <= limit; prefers multiples of `align` unless the
    aligned choice is less than half of the best unaligned one."""
    limit = int(max(1, min(n, limit)))
    best, best_aligned = 1, 0
    for d in range(1, limit + 1):
        if n % d == 0:
            best = d
            if d % align == 0:
                best_aligned = d
    if best_aligned >= max(1, best // 2):
        return best_aligned
    return best


def normalize_layer(x, means, sds, *, target_block_bytes=2 * 1024 * 1024,
                    min_grid_steps=8):
    """(x - mean[c]) / sd[c] broadcast over N, H, W for an NCHW batch."""
    n, c, h, w = x.shape
    hw = h * w
    itemsize = jnp.dtype(x.dtype).itemsize
    total_bytes = x.size * itemsize

    means_f32 = jnp.asarray(means, dtype=jnp.float32).reshape(c)
    # Exact host-side reciprocal: the kernel multiplies instead of dividing.
    # (sd == 0 -> inf, same behavior as the reference divide.)
    inv_sds_f32 = 1.0 / jnp.asarray(sds, dtype=jnp.float32).reshape(c)

    # Block budget: ~target_block_bytes, shrunk on large inputs so the grid keeps
    # enough parallel steps to feed both v7x TensorCores / ramp the pipeline.
    # 2 in + 2 out buffers at 2 MiB stay well inside every generation's scoped VMEM.
    budget = min(target_block_bytes,
                 max(total_bytes // min_grid_steps, 512 * 1024))

    sub_align = 16 if itemsize == 2 else (32 if itemsize == 1 else 8)

    if hw % 128 == 0:
        rows = hw // 128
        x_in = x.reshape(n, c, rows, 128)         # lane-dense view of the plane
        plane_bytes = rows * 128 * itemsize
        sample_bytes = c * plane_bytes
        if sample_bytes <= budget:
            # Whole samples per block: fully contiguous HBM DMA across N,C,H,W.
            n_blk = _best_divisor(n, budget // sample_bytes)
            block = (n_blk, c, rows, 128)
            grid = (n // n_blk,)
            index_map = lambda ni, m, s: (ni, 0, 0, 0)
            c_blk, chan_axis = c, None
        elif plane_bytes <= budget:
            # One sample per step, contiguous channel range per block.
            c_blk = _best_divisor(c, budget // plane_bytes)
            block = (1, c_blk, rows, 128)
            grid = (n, c // c_blk)
            index_map = lambda ni, ci, m, s: (ni, ci, 0, 0)
            chan_axis = 1
        else:
            # Plane exceeds the budget: split the spatial rows (sublane-aligned
            # when possible) so pipelining / VMEM limits hold for any H, W.
            row_blk = _best_divisor(rows, budget // (128 * itemsize), align=sub_align)
            block = (1, 1, row_blk, 128)
            grid = (n, c, rows // row_blk)
            index_map = lambda ni, ci, ri, m, s: (ni, ci, ri, 0)
            c_blk, chan_axis = 1, 1
    else:
        # hw not a multiple of 128: flatten (H, W) -> hw so stores are as
        # lane-dense as possible (vs. last dim = W).
        x_in = x.reshape(n, c, hw)
        plane_bytes = hw * itemsize
        sample_bytes = c * plane_bytes
        if sample_bytes <= budget:
            n_blk = _best_divisor(n, budget // sample_bytes)
            block = (n_blk, c, hw)
            grid = (n // n_blk,)
            index_map = lambda ni, m, s: (ni, 0, 0)
            c_blk, chan_axis = c, None
        else:
            # TODO(synk): a non-128-multiple plane larger than the budget still moves a
            # whole plane per step (the last dim cannot be split and stay (8,128)-legal
            # without padding).
            c_blk = _best_divisor(c, max(budget // plane_bytes, 1))
            block = (1, c_blk, hw)
            grid = (n, c // c_blk)
            index_map = lambda ni, ci, m, s: (ni, ci, 0)
            chan_axis = 1

    # bf16 stays bf16 in the VALU (v6e/v7x); everything else computes in f32.
    compute_dtype = jnp.bfloat16 if x.dtype == jnp.bfloat16 else jnp.float32
    kernel = functools.partial(_normalize_kernel, c_blk, chan_axis, compute_dtype)

    grid_spec = pltpu.PrefetchScalarGridSpec(
        num_scalar_prefetch=2,                    # means, inv_sds -> SMEM
        grid=grid,
        in_specs=[pl.BlockSpec(block, index_map)],
        out_specs=pl.BlockSpec(block, index_map),
    )

    out = pl.pallas_call(
        kernel,
        out_shape=jax.ShapeDtypeStruct(x_in.shape, x.dtype),
        grid_spec=grid_spec,
        compiler_params=pltpu.CompilerParams(
            dimension_semantics=("parallel",) * len(grid),
            vmem_limit_bytes=32 * 1024 * 1024,
        ),
        cost_estimate=pl.CostEstimate(
            flops=2 * int(x.size), transcendentals=0,
            bytes_accessed=2 * int(total_bytes)),
    )(means_f32, inv_sds_f32, x_in)

    return out.reshape(n, c, h, w)


if __name__ == "__main__":
    key = jax.random.PRNGKey(0)
    k1, k2, k3 = jax.random.split(key, 3)

    # Main test: lane-dense path (H*W % 128 == 0), channels folded into one block.
    N, C, H, W = 2, 4, 16, 16
    x = jax.random.normal(k1, (N, C, H, W), dtype=jnp.float32)
    means = jnp.array([0.485, 0.456, 0.406, 0.5], dtype=jnp.float32)
    sds = jnp.array([0.229, 0.224, 0.225, 0.25], dtype=jnp.float32)

    out = jax.block_until_ready(normalize_layer(x, means, sds))
    ref = (x - means[None, :, None, None]) / sds[None, :, None, None]
    assert out.shape == (N, C, H, W)
    assert jnp.allclose(out, ref, atol=1e-5, rtol=1e-5), "f32 lane-dense mismatch"

    # Fallback path: H*W not a multiple of 128 (flattened-hw blocks).
    x2 = jax.random.normal(k2, (2, 3, 10, 10), dtype=jnp.float32)
    m2 = jnp.array([0.485, 0.456, 0.406], dtype=jnp.float32)
    s2 = jnp.array([0.229, 0.224, 0.225], dtype=jnp.float32)
    out2 = jax.block_until_ready(normalize_layer(x2, m2, s2))
    ref2 = (x2 - m2[None, :, None, None]) / s2[None, :, None, None]
    assert jnp.allclose(out2, ref2, atol=1e-5, rtol=1e-5), "f32 fallback mismatch"

    # bf16 path: arithmetic stays in bf16 inside the kernel (loose tolerance vs f32 ref).
    x3 = jax.random.normal(k3, (N, C, H, W), dtype=jnp.bfloat16)
    out3 = jax.block_until_ready(normalize_layer(x3, means, sds))
    ref3 = ((x3.astype(jnp.float32) - means[None, :, None, None])
            / sds[None, :, None, None])
    assert jnp.allclose(out3.astype(jnp.float32), ref3, atol=0.1, rtol=0.05), \
        "bf16 mismatch"

    print("KERNEL_OK")
</pallas_src>

<mosaic_0001>
module attributes {stable_mosaic.version = 11 : i64} {
  func.func @_normalize_kernel(%arg0: i32, %arg1: memref<4xf32, #tpu.memory_space<smem>>, %arg2: memref<4xf32, #tpu.memory_space<smem>>, %arg3: memref<2x4x2x128xf32, #tpu.memory_space<vmem>>, %arg4: memref<2x4x2x128xf32, #tpu.memory_space<vmem>>) attributes {dimension_semantics = [#tpu.dimension_semantics<parallel>], iteration_bounds = array<i64: 1>, scalar_prefetch = 2 : i64, scratch_operands = 0 : i64, tpu.core_type = #tpu.core_type<tc>, window_params = [{transform_indices = @transform_0, window_bounds = array<i64: 2, 4, 2, 128>}, {transform_indices = @transform_1, window_bounds = array<i64: 2, 4, 2, 128>}]} {
    %c0 = arith.constant 0 : index
    %0 = memref.load %arg1[%c0] : memref<4xf32, #tpu.memory_space<smem>>
    %c0_0 = arith.constant 0 : index
    %1 = memref.load %arg2[%c0_0] : memref<4xf32, #tpu.memory_space<smem>>
    %c0_1 = arith.constant 0 : index
    %c0_2 = arith.constant 0 : index
    %c0_3 = arith.constant 0 : index
    %c0_4 = arith.constant 0 : index
    %2 = vector.load %arg3[%c0_1, %c0_2, %c0_3, %c0_4] : memref<2x4x2x128xf32, #tpu.memory_space<vmem>>, vector<2x1x2x128xf32>
    %3 = vector.shape_cast %2 : vector<2x1x2x128xf32> to vector<2x2x128xf32>
    %4 = vector.broadcast %0 : f32 to vector<128xf32>
    %5 = vector.broadcast %1 : f32 to vector<128xf32>
    %6 = vector.shape_cast %4 : vector<128xf32> to vector<1x1x128xf32>
    %7 = vector.broadcast %6 : vector<1x1x128xf32> to vector<2x2x128xf32>
    %8 = arith.subf %3, %7 : vector<2x2x128xf32>
    %9 = vector.shape_cast %5 : vector<128xf32> to vector<1x1x128xf32>
    %10 = vector.broadcast %9 : vector<1x1x128xf32> to vector<2x2x128xf32>
    %11 = arith.mulf %8, %10 : vector<2x2x128xf32>
    %c0_5 = arith.constant 0 : index
    %c0_6 = arith.constant 0 : index
    %c0_7 = arith.constant 0 : index
    %c0_8 = arith.constant 0 : index
    %12 = vector.load %arg4[%c0_5, %c0_6, %c0_7, %c0_8] : memref<2x4x2x128xf32, #tpu.memory_space<vmem>>, vector<2x1x2x128xf32>
    %13 = vector.shape_cast %12 : vector<2x1x2x128xf32> to vector<2x2x128xf32>
    %14 = vector.shape_cast %11 : vector<2x2x128xf32> to vector<2x1x2x128xf32>
    tpu.vector_store %arg4[%c0_5, %c0_6, %c0_7, %c0_8], %14 {strides = array<i32>} : memref<2x4x2x128xf32, #tpu.memory_space<vmem>>, vector<2x1x2x128xf32>,
    %c1 = arith.constant 1 : index
    %15 = memref.load %arg1[%c1] : memref<4xf32, #tpu.memory_space<smem>>
    %c1_9 = arith.constant 1 : index
    %16 = memref.load %arg2[%c1_9] : memref<4xf32, #tpu.memory_space<smem>>
    %c0_10 = arith.constant 0 : index
    %c1_11 = arith.constant 1 : index
    %c0_12 = arith.constant 0 : index
    %c0_13 = arith.constant 0 : index
    %17 = vector.load %arg3[%c0_10, %c1_11, %c0_12, %c0_13] : memref<2x4x2x128xf32, #tpu.memory_space<vmem>>, vector<2x1x2x128xf32>
    %18 = vector.shape_cast %17 : vector<2x1x2x128xf32> to vector<2x2x128xf32>
    %19 = vector.broadcast %15 : f32 to vector<128xf32>
    %20 = vector.broadcast %16 : f32 to vector<128xf32>
    %21 = vector.shape_cast %19 : vector<128xf32> to vector<1x1x128xf32>
    %22 = vector.broadcast %21 : vector<1x1x128xf32> to vector<2x2x128xf32>
    %23 = arith.subf %18, %22 : vector<2x2x128xf32>
    %24 = vector.shape_cast %20 : vector<128xf32> to vector<1x1x128xf32>
    %25 = vector.broadcast %24 : vector<1x1x128xf32> to vector<2x2x128xf32>
    %26 = arith.mulf %23, %25 : vector<2x2x128xf32>
    %c0_14 = arith.constant 0 : index
    %c1_15 = arith.constant 1 : index
    %c0_16 = arith.constant 0 : index
    %c0_17 = arith.constant 0 : index
    %27 = vector.load %arg4[%c0_14, %c1_15, %c0_16, %c0_17] : memref<2x4x2x128xf32, #tpu.memory_space<vmem>>, vector<2x1x2x128xf32>
    %28 = vector.shape_cast %27 : vector<2x1x2x128xf32> to vector<2x2x128xf32>
    %29 = vector.shape_cast %26 : vector<2x2x128xf32> to vector<2x1x2x128xf32>
    tpu.vector_store %arg4[%c0_14, %c1_15, %c0_16, %c0_17], %29 {strides = array<i32>} : memref<2x4x2x128xf32, #tpu.memory_space<vmem>>, vector<2x1x2x128xf32>,
    %c2 = arith.constant 2 : index
    %30 = memref.load %arg1[%c2] : memref<4xf32, #tpu.memory_space<smem>>
    %c2_18 = arith.constant 2 : index
    %31 = memref.load %arg2[%c2_18] : memref<4xf32, #tpu.memory_space<smem>>
    %c0_19 = arith.constant 0 : index
    %c2_20 = arith.constant 2 : index
    %c0_21 = arith.constant 0 : index
    %c0_22 = arith.constant 0 : index
    %32 = vector.load %arg3[%c0_19, %c2_20, %c0_21, %c0_22] : memref<2x4x2x128xf32, #tpu.memory_space<vmem>>, vector<2x1x2x128xf32>
    %33 = vector.shape_cast %32 : vector<2x1x2x128xf32> to vector<2x2x128xf32>
    %34 = vector.broadcast %30 : f32 to vector<128xf32>
    %35 = vector.broadcast %31 : f32 to vector<128xf32>
    %36 = vector.shape_cast %34 : vector<128xf32> to vector<1x1x128xf32>
    %37 = vector.broadcast %36 : vector<1x1x128xf32> to vector<2x2x128xf32>
    %38 = arith.subf %33, %37 : vector<2x2x128xf32>
    %39 = vector.shape_cast %35 : vector<128xf32> to vector<1x1x128xf32>
    %40 = vector.broadcast %39 : vector<1x1x128xf32> to vector<2x2x128xf32>
    %41 = arith.mulf %38, %40 : vector<2x2x128xf32>
    %c0_23 = arith.constant 0 : index
    %c2_24 = arith.constant 2 : index
    %c0_25 = arith.constant 0 : index
    %c0_26 = arith.constant 0 : index
    %42 = vector.load %arg4[%c0_23, %c2_24, %c0_25, %c0_26] : memref<2x4x2x128xf32, #tpu.memory_space<vmem>>, vector<2x1x2x128xf32>
    %43 = vector.shape_cast %42 : vector<2x1x2x128xf32> to vector<2x2x128xf32>
    %44 = vector.shape_cast %41 : vector<2x2x128xf32> to vector<2x1x2x128xf32>
    tpu.vector_store %arg4[%c0_23, %c2_24, %c0_25, %c0_26], %44 {strides = array<i32>} : memref<2x4x2x128xf32, #tpu.memory_space<vmem>>, vector<2x1x2x128xf32>,
    %c3 = arith.constant 3 : index
    %45 = memref.load %arg1[%c3] : memref<4xf32, #tpu.memory_space<smem>>
    %c3_27 = arith.constant 3 : index
    %46 = memref.load %arg2[%c3_27] : memref<4xf32, #tpu.memory_space<smem>>
    %c0_28 = arith.constant 0 : index
    %c3_29 = arith.constant 3 : index
    %c0_30 = arith.constant 0 : index
    %c0_31 = arith.constant 0 : index
    %47 = vector.load %arg3[%c0_28, %c3_29, %c0_30, %c0_31] : memref<2x4x2x128xf32, #tpu.memory_space<vmem>>, vector<2x1x2x128xf32>
    %48 = vector.shape_cast %47 : vector<2x1x2x128xf32> to vector<2x2x128xf32>
    %49 = vector.broadcast %45 : f32 to vector<128xf32>
    %50 = vector.broadcast %46 : f32 to vector<128xf32>
    %51 = vector.shape_cast %49 : vector<128xf32> to vector<1x1x128xf32>
    %52 = vector.broadcast %51 : vector<1x1x128xf32> to vector<2x2x128xf32>
    %53 = arith.subf %48, %52 : vector<2x2x128xf32>
    %54 = vector.shape_cast %50 : vector<128xf32> to vector<1x1x128xf32>
    %55 = vector.broadcast %54 : vector<1x1x128xf32> to vector<2x2x128xf32>
    %56 = arith.mulf %53, %55 : vector<2x2x128xf32>
    %c0_32 = arith.constant 0 : index
    %c3_33 = arith.constant 3 : index
    %c0_34 = arith.constant 0 : index
    %c0_35 = arith.constant 0 : index
    %57 = vector.load %arg4[%c0_32, %c3_33, %c0_34, %c0_35] : memref<2x4x2x128xf32, #tpu.memory_space<vmem>>, vector<2x1x2x128xf32>
    %58 = vector.shape_cast %57 : vector<2x1x2x128xf32> to vector<2x2x128xf32>
    %59 = vector.shape_cast %56 : vector<2x2x128xf32> to vector<2x1x2x128xf32>
    tpu.vector_store %arg4[%c0_32, %c3_33, %c0_34, %c0_35], %59 {strides = array<i32>} : memref<2x4x2x128xf32, #tpu.memory_space<vmem>>, vector<2x1x2x128xf32>,
    return
  }
  func.func @transform_0(%arg0: i32, %arg1: memref<4xf32, #tpu.memory_space<smem>>, %arg2: memref<4xf32, #tpu.memory_space<smem>>) -> (i32, i32, i32, i32) {
    %c0_i32 = arith.constant 0 : i32
    %c0_i32_0 = arith.constant 0 : i32
    %c0_i32_1 = arith.constant 0 : i32
    %c0_i32_2 = arith.constant 0 : i32
    return %arg0, %c0_i32, %c0_i32_0, %c0_i32_1 : i32, i32, i32, i32
  }
  func.func @transform_1(%arg0: i32, %arg1: memref<4xf32, #tpu.memory_space<smem>>, %arg2: memref<4xf32, #tpu.memory_space<smem>>) -> (i32, i32, i32, i32) {
    %c0_i32 = arith.constant 0 : i32
    %c0_i32_0 = arith.constant 0 : i32
    %c0_i32_1 = arith.constant 0 : i32
    %c0_i32_2 = arith.constant 0 : i32
    return %arg0, %c0_i32, %c0_i32_0, %c0_i32_1 : i32, i32, i32, i32
  }
}

</mosaic_0001>

<bundles_post_ra>
// kernel: tpu_custom_call.1
= control target key start
LH: loop header
LB: loop body
LE: loop exit
PB: predicated region body
PF: predicated region fallthrough
CT: control target
= control target key end

     0   :  { %s268_s0 = inlined_call_operand.hbm [shape: f32[4], index: 0, kind: input, shape index: {}]   ;;  %s269_s2 = inlined_call_operand.hbm [shape: f32[2,4,2,128], index: 2, kind: input, shape index: {}]   ;;  %s270_s3 = inlined_call_operand.hbm [shape: f32[2,4,2,128], index: 3, kind: output, shape index: {}]   ;;  %s271_s1 = inlined_call_operand.vmem [shape: f32[4], index: 1, kind: input, shape index: {}]  }
   0x1   :  { %s116_s14 = scalar_lea.hbm %s268_s0, 16 }
   0x2   :  { %p117_p0 = scmp.ne.s32.totalorder %s268_s0, %s116_s14  ;;  %p120_p1 = scmp.lt.u32.totalorder %s116_s14, %s268_s0 }
   0x4   :  { %p122_p2 = pnand %p120_p1, %p117_p0 }
   0x6   :  { %125 = shalt.err (!%p122_p2)  }
   0x7   :  { %s188_s19 = smov [#allocation3]   ;;  %s10_s24 = sshll.u32 %s271_s1, 4  ;;  %s11_s24 = int_to_ptr.vmem [resolvable:$true] %s10_s24 }
   0x8   :  { %9 = dma.hbm_to_smem %s268_s0, 16, %s188_s19, [#allocation2] }
   0x9   :  { %s126_s25 = scalar_lea.vmem %s11_s24, 16  ;;  %p131_p4 = scmp.lt.s32.totalorder %s11_s24, %s11_s24 }
   0xa   :  { %p127_p3 = scmp.ne.s32.totalorder %s11_s24, %s126_s25  ;;  %p132_p5 = scmp.lt.s32.totalorder %s126_s25, %s126_s25 }
   0xc   :  { %p133_p6 = por %p132_p5, %p131_p4 }
   0xe   :  { %p134_p7 = pnand %p133_p6, %p127_p3 }
  0x10   :  { %137 = shalt.err (!%p134_p7)  }
  0x11   :  { %s189_s26 = smov [#allocation4]  }
  0x12   :  { %13 = dma.vmem_to_smem %s11_s24, 16, %s189_s26, [#allocation2] }
  0x13   :  { %182 = dma.done.wait [#allocation2], 32 }
  0x14   :  { %183 = vsyncadd [#allocation2], 4294967264 }
  0x15   :  { %15 = sfence }
  0x16   :  { %16 = vsyncpa [#allocation6], 0 }
  0x17   :  { %17 = vsyncpa [#allocation7], 0  ;;  %s190_s0 = smov [#allocation5]   ;;  %s138_s29 = scalar_lea.hbm %s269_s2, 256 }
  0x18   :  { %s23_s27 = sshll.u32 %s190_s0, 4  ;;  %p139_p8 = scmp.ne.s32.totalorder %s269_s2, %s138_s29  ;;  %s24_s27 = int_to_ptr.vmem [resolvable:$true] %s23_s27 }
  0x19   :  { %p142_p9 = scmp.lt.u32.totalorder %s138_s29, %s269_s2 }
  0x1b   :  { %p144_p10 = pnand %p142_p9, %p139_p8 }
  0x1d   :  { %147 = shalt.err (!%p144_p10)
}
  0x1e   :  { %s148_s7 = scalar_lea.vmem %s24_s27, 256  ;;  %p153_p12 = scmp.lt.s32.totalorder %s24_s27, %s24_s27 }
  0x1f   :  { %p149_p11 = scmp.ne.s32.totalorder %s24_s27, %s148_s7  ;;  %p154_p13 = scmp.lt.s32.totalorder %s148_s7, %s148_s7 }
  0x21   :  { %p155_p0 = por %p154_p13, %p153_p12 }
  0x23   :  { %p156_p1 = pnand %p155_p0, %p149_p11 }
  0x25   :  { %159 = shalt.err (!%p156_p1)
}
  0x26   :  { %s191_s8 = smov 32   ;;  %s192_s9 = smov 2  }
  0x27   :  { %29 = dma.hbm_to_vmem [thread:$0]  %s269_s2, 256, %s24_s27, [#allocation6], %s191_s8, %s191_s8, %s192_s9  }
  0x28   :  { %184 = dma.done.wait [#allocation6], 256  }
  0x29   :  { %185 = vsyncadd [#allocation6], 4294967040  ;;  %s33_s12 = sld [smem:[#allocation3]]  ;;  %s104_s14 = sld [smem:[#allocation3 + $0x1]]  ;;  %v35_v0 = vld [vmem:[#allocation5] sm:$0x3] }
  0x2a   :  { %s34_s13 = sld [smem:[#allocation4]]  ;;  %s105_s15 = sld [smem:[#allocation4 + $0x1]]  ;;  %v36_v3 = vld [vmem:[#allocation5 + $0x8] sm:$0x3]  ;;  %v48_v4 = vld [vmem:[#allocation5 + $0x2] sm:$0x3] }
  0x2b   :  { %s106_s16 = sld [smem:[#allocation3 + $0x2]]  ;;  %s246_s18 = sld [smem:[#allocation3 + $0x3]]  ;;  %v49_v9 = vld [vmem:[#allocation5 + $0xa] sm:$0x3]  ;;  %v62_v10 = vld [vmem:[#allocation5 + $0x4] sm:$0x3] }
  0x2c   :  { %s244_s17 = sld [smem:[#allocation4 + $0x2]]  ;;  %s248_s19 = sld [smem:[#allocation4 + $0x3]]  ;;  %v63_v11 = vld [vmem:[#allocation5 + $0xc] sm:$0x3]  ;;  %v76_v16 = vld [vmem:[#allocation5 + $0x6] sm:$0x3] }
  0x2d   :  { %v77_v17 = vld [vmem:[#allocation5 + $0xe] sm:$0x3]  ;;  %s193_s2 = smov [#allocation8]  }
  0x2e   :  { %s92_s20 = sshll.u32 %s193_s2, 4  ;;  %s93_s20 = int_to_ptr.vmem [resolvable:$true] %s92_s20 }
  0x2f   :  { %v37_v1 = vstv %s33_s12  ;;  %v50_v7 = vstv %s104_s14  ;;  %s160_s21 = scalar_lea.vmem %s93_s20, 256  ;;  %p165_p3 = scmp.lt.s32.totalorder %s93_s20, %s93_s20 }
  0x30   :  { %v40_v2 = vstv %s34_s13  ;;  %v38_v5 = vsub.f32 %v35_v0, %v37_v1  ;;  %v39_v6 = vsub.f32 %v36_v3, %v37_v1  ;;  %v53_v8 = vstv %s105_s15  ;;  %p161_p2 = scmp.ne.s32.totalorder %s93_s20, %s160_s21  ;;  %p166_p4 = scmp.lt.s32.totalorder %s160_s21, %s160_s21 }
  0x31   :  { %v51_v12 = vsub.f32 %v48_v4, %v50_v7  ;;  %v52_v13 = vsub.f32 %v49_v9, %v50_v7  ;;  %v64_v14 = vstv %s106_s16  ;;  %v78_v24 = vstv %s246_s18 }
  0x32   :  { %v67_v15 = vstv %s244_s17  ;;  %v41_v18 = vmul.f32 %v40_v2, %v38_v5  ;;  %v42_v19 = vmul.f32 %v40_v2, %v39_v6  ;;  %v65_v20 = vsub.f32 %v62_v10, %v64_v14  ;;  %p167_p5 = por %p166_p4, %p165_p3 }
  0x33   :  { %v66_v21 = vsub.f32 %v63_v11, %v64_v14  ;;  %v54_v22 = vmul.f32 %v53_v8, %v51_v12  ;;  %v55_v23 = vmul.f32 %v53_v8, %v52_v13  ;;  %v81_v25 = vstv %s248_s19 }
  0x34   :  { %43 = vst [vmem:[#allocation8] sm:$0x3] %v41_v18  ;;  %44 = vst [vmem:[#allocation8 + $0x8] sm:$0x3] %v42_v19  ;;  %v68_v26 = vmul.f32 %v67_v15, %v65_v20  ;;  %v79_v28 = vsub.f32 %v76_v16, %v78_v24  ;;  %v80_v29 = vsub.f32 %v77_v17, %v78_v24  ;;  %p168_p6 = pnand %p167_p5, %p161_p2 }
  0x35   :  { %v69_v27 = vmul.f32 %v67_v15, %v66_v21  ;;  %57 = vst [vmem:[#allocation8 + $0x2] sm:$0x3] %v54_v22  ;;  %58 = vst [vmem:[#allocation8 + $0xa] sm:$0x3] %v55_v23 }
  0x36   :  { %71 = vst [vmem:[#allocation8 + $0x4] sm:$0x3] %v68_v26  ;;  %v82_v30 = vmul.f32 %v81_v25, %v79_v28  ;;  %v83_v31 = vmul.f32 %v81_v25, %v80_v29 }
  0x37   :  { %72 = vst [vmem:[#allocation8 + $0xc] sm:$0x3] %v69_v27 }
  0x38   :  { %85 = vst [vmem:[#allocation8 + $0x6] sm:$0x3] %v82_v30  ;;  %86 = vst [vmem:[#allocation8 + $0xe] sm:$0x3] %v83_v31 }
  0x39   :  { %171 = shalt.err (!%p168_p6)
}
  0x3a   :  { %s172_s24 = scalar_lea.hbm %s270_s3, 256 }
  0x3b   :  { %p173_p7 = scmp.ne.s32.totalorder %s270_s3, %s172_s24  ;;  %p176_p8 = scmp.lt.u32.totalorder %s172_s24, %s270_s3 }
  0x3d   :  { %p178_p9 = pnand %p176_p8, %p173_p7 }
  0x3f   :  { %181 = shalt.err (!%p178_p9)
}
  0x40   :  { %98 = dma.vmem_to_hbm [thread:$0]  %s93_s20, 256, %s270_s3, [#allocation7], %s191_s8, %s191_s8, %s192_s9  }
  0x41   :  { %186 = dma.done.wait [#allocation7], 256  }
  0x42   :  { %187 = vsyncadd [#allocation7], 4294967040 }
  0x43   :  { %102 = vsyncpa [#allocation6], 1 }
  0x44   :  { %103 = vsyncpa [#allocation7], 1 }

</bundles_post_ra>
